<compile_context>
chip_gen: v7x
topology: tpu7x:2x2x1
jax: 0.10.0
libtpu: 0.0.40
codegen_flags: <defaults>
</compile_context>

<pallas_src>
import functools

import jax
import jax.numpy as jnp
from jax.experimental import pallas as pl
from jax.experimental.pallas import tpu as pltpu


# -----------------------------------------------------------------------------
# Kernel
# -----------------------------------------------------------------------------
def res_lstm_cell_kernel(z_ref, cx_ref, w_ref, b_ref, hy_ref, cy_ref):
    """One fused MXU matmul + elementwise gating for a ResLSTM cell.

    z_ref : (tb, I+2H)   fused activation [x | hx | cx] (f32 or bf16)
    cx_ref: (tb, H)      cell state in f32 (elementwise path)
    w_ref : (I+2H, 5H)   fused packed weight (same dtype as z)
    b_ref : (1, 5H)      fused bias, f32
    """
    H = cx_ref.shape[-1]

    # Single MXU call for the whole cell; f32 accumulation.
    g = jnp.dot(z_ref[...], w_ref[...],
                preferred_element_type=jnp.float32) + b_ref[...]

    ingate     = jax.nn.sigmoid(g[:, 0 * H:1 * H])
    forgetgate = jax.nn.sigmoid(g[:, 1 * H:2 * H])
    outgate    = jax.nn.sigmoid(g[:, 2 * H:3 * H])
    cellgate   = jnp.tanh(g[:, 3 * H:4 * H])
    residual   = g[:, 4 * H:5 * H]            # x @ Wir^T (no bias)

    cx = cx_ref[...]
    cy = forgetgate * cx + ingate * cellgate
    ry = jnp.tanh(cy)
    hy = outgate * (ry + residual)

    hy_ref[...] = hy.astype(hy_ref.dtype)
    cy_ref[...] = cy.astype(cy_ref.dtype)


# -----------------------------------------------------------------------------
# One-time parameter packing (NOT per-call work)
# -----------------------------------------------------------------------------
def pack_params(params, compute_dtype=jnp.float32):
    """Pack PyTorch-layout ResLSTMCell params into one fused weight/bias.

    Rows of the fused weight correspond to [x (I) | hx (H) | cx (H)];
    columns to [ifo gates (3H) | cellgate (H) | residual (H)].
    """
    H = params["weight_hh"].shape[0]
    I = params["weight_ii"].shape[1]
    f32 = jnp.float32

    wii_t = params["weight_ii"].T.astype(f32)   # (I, 3H)
    wih_t = params["weight_ih"].T.astype(f32)   # (H, 3H)
    wic_t = params["weight_ic"].T.astype(f32)   # (H, 3H)
    whh_t = params["weight_hh"].T.astype(f32)   # (H, H)
    wir_t = params["weight_ir"].T.astype(f32)   # (I, H)

    row_x = jnp.concatenate([wii_t, jnp.zeros((I, H), f32), wir_t], axis=1)
    row_h = jnp.concatenate([wih_t, whh_t, jnp.zeros((H, H), f32)], axis=1)
    row_c = jnp.concatenate([wic_t, jnp.zeros((H, 2 * H), f32)], axis=1)
    w_fused = jnp.concatenate([row_x, row_h, row_c], axis=0)      # (I+2H, 5H)

    b_ifo = (params["bias_ii"] + params["bias_ih"] + params["bias_ic"]).astype(f32)
    b_fused = jnp.concatenate(
        [b_ifo, params["bias_hh"].astype(f32), jnp.zeros((H,), f32)]
    ).reshape(1, 5 * H)                                           # (1, 5H), f32

    return {
        "w": w_fused.astype(compute_dtype),   # matmul dtype (f32 or bf16)
        "b": b_fused,                         # bias stays f32 (post-accum add)
        "input_size": I,
        "hidden_size": H,
    }


# -----------------------------------------------------------------------------
# Wrapper
# -----------------------------------------------------------------------------
def res_lstm_cell(x, hidden, packed, *, block_b=128, donate_state=False):
    """Forward pass matching PyTorch ResLSTMCell: returns (hy, (hy, cy))."""
    hx, cx = hidden
    B, H = cx.shape
    mm_dtype = packed["w"].dtype

    # Tiny per-call activation concat; weights are already packed.
    z = jnp.concatenate([x, hx, cx], axis=1).astype(mm_dtype)     # (B, I+2H)
    Kz = z.shape[1]
    cx32 = cx.astype(jnp.float32)

    tb = min(block_b, B)
    grid = (pl.cdiv(B, tb),)

    kernel = pl.pallas_call(
        res_lstm_cell_kernel,
        out_shape=(jax.ShapeDtypeStruct((B, H), jnp.float32),
                   jax.ShapeDtypeStruct((B, H), jnp.float32)),
        grid_spec=pltpu.PrefetchScalarGridSpec(
            num_scalar_prefetch=0,
            grid=grid,
            in_specs=[
                pl.BlockSpec((tb, Kz),     lambda i: (i, 0)),   # z (batch-tiled)
                pl.BlockSpec((tb, H),      lambda i: (i, 0)),   # cx (batch-tiled)
                pl.BlockSpec((Kz, 5 * H),  lambda i: (0, 0)),   # fused W (resident)
                pl.BlockSpec((1, 5 * H),   lambda i: (0, 0)),   # fused bias (resident)
            ],
            out_specs=(
                pl.BlockSpec((tb, H), lambda i: (i, 0)),        # hy
                pl.BlockSpec((tb, H), lambda i: (i, 0)),        # cy
            ),
        ),
        compiler_params=pltpu.CompilerParams(
            dimension_semantics=("parallel",),        # shards across v7x dual TCs
            vmem_limit_bytes=32 * 1024 * 1024,
        ),
        # For recurrent use: write cy over cx's buffer (state immediately
        # consumed next step). Off by default so callers may reuse cx.
        input_output_aliases={1: 1} if donate_state else {},
    )

    hy, cy = kernel(z, cx32, packed["w"], packed["b"])
    return hy, (hy, cy)


# -----------------------------------------------------------------------------
# Init + reference (pure JAX, mirrors the PyTorch module)
# -----------------------------------------------------------------------------
def init_params(key, input_size, hidden_size):
    ks = jax.random.split(key, 9)
    return {
        "weight_ii": jax.random.normal(ks[0], (3 * hidden_size, input_size), jnp.float32),
        "weight_ic": jax.random.normal(ks[1], (3 * hidden_size, hidden_size), jnp.float32),
        "weight_ih": jax.random.normal(ks[2], (3 * hidden_size, hidden_size), jnp.float32),
        "bias_ii": jax.random.normal(ks[3], (3 * hidden_size,), jnp.float32),
        "bias_ic": jax.random.normal(ks[4], (3 * hidden_size,), jnp.float32),
        "bias_ih": jax.random.normal(ks[5], (3 * hidden_size,), jnp.float32),
        "weight_hh": jax.random.normal(ks[6], (hidden_size, hidden_size), jnp.float32),
        "bias_hh": jax.random.normal(ks[7], (hidden_size,), jnp.float32),
        "weight_ir": jax.random.normal(ks[8], (hidden_size, input_size), jnp.float32),
    }


def reference(x, hx, cx, p, matmul_dtype=jnp.float32):
    """Pure-JAX reference. matmul_dtype quantizes matmul inputs (bf16 check)."""
    q = lambda a: a.astype(matmul_dtype).astype(jnp.float32)
    ifo = (jnp.dot(q(x), q(p["weight_ii"].T), preferred_element_type=jnp.float32) + p["bias_ii"]
           + jnp.dot(q(hx), q(p["weight_ih"].T), preferred_element_type=jnp.float32) + p["bias_ih"]
           + jnp.dot(q(cx), q(p["weight_ic"].T), preferred_element_type=jnp.float32) + p["bias_ic"])
    H = cx.shape[1]
    i, f, o = ifo[:, :H], ifo[:, H:2 * H], ifo[:, 2 * H:]
    i = jax.nn.sigmoid(i)
    f = jax.nn.sigmoid(f)
    o = jax.nn.sigmoid(o)
    g = jnp.tanh(jnp.dot(q(hx), q(p["weight_hh"].T),
                         preferred_element_type=jnp.float32) + p["bias_hh"])
    cy = f * cx + i * g
    ry = jnp.tanh(cy)
    hy = o * (ry + jnp.dot(q(x), q(p["weight_ir"].T),
                           preferred_element_type=jnp.float32))
    return hy, cy


# -----------------------------------------------------------------------------
# Self-test
# -----------------------------------------------------------------------------
def _run_case(key, B, I, H, compute_dtype, atol, rtol):
    kx, kh, kc, kp = jax.random.split(key, 4)
    x = jax.random.normal(kx, (B, I), jnp.float32)
    hx = jax.random.normal(kh, (B, H), jnp.float32)
    cx = jax.random.normal(kc, (B, H), jnp.float32)
    params = init_params(kp, I, H)

    packed = pack_params(params, compute_dtype=compute_dtype)   # one-time packing
    hy, (hy2, cy) = res_lstm_cell(x, (hx, cx), packed)
    jax.block_until_ready((hy, hy2, cy))

    hy_ref, cy_ref = reference(x, hx, cx, params, matmul_dtype=compute_dtype)
    assert jnp.allclose(hy, hy_ref, atol=atol, rtol=rtol), \
        f"hy mismatch (B={B}, I={I}, H={H}, dtype={compute_dtype})"
    assert jnp.allclose(cy, cy_ref, atol=atol, rtol=rtol), \
        f"cy mismatch (B={B}, I={I}, H={H}, dtype={compute_dtype})"
    assert jnp.allclose(hy, hy2), "hy duplicate output mismatch"


if __name__ == "__main__":
    key = jax.random.PRNGKey(0)
    k1, k2, k3 = jax.random.split(key, 3)

    # Primary case: H multiple of 128 -> lane-aligned gate slices & stores.
    _run_case(k1, B=8, I=64, H=128, compute_dtype=jnp.float32, atol=1e-3, rtol=1e-3)

    # Generality case: small, non-lane-aligned hidden size still correct.
    _run_case(k2, B=8, I=16, H=32, compute_dtype=jnp.float32, atol=1e-3, rtol=1e-3)

    # bf16 matmul path (f32 accumulation / f32 gating), checked vs. a
    # bf16-quantized reference.
    _run_case(k3, B=8, I=64, H=128, compute_dtype=jnp.bfloat16, atol=5e-3, rtol=5e-3)

    print("KERNEL_OK")
</pallas_src>

<mosaic_0001>
module attributes {stable_mosaic.version = 11 : i64} {
  func.func @res_lstm_cell_kernel(%arg0: i32, %arg1: memref<8x320xf32, #tpu.memory_space<vmem>>, %arg2: memref<8x128xf32, #tpu.memory_space<vmem>>, %arg3: memref<320x640xf32, #tpu.memory_space<vmem>>, %arg4: memref<1x640xf32, #tpu.memory_space<vmem>>, %arg5: memref<8x128xf32, #tpu.memory_space<vmem>>, %arg6: memref<8x128xf32, #tpu.memory_space<vmem>>) attributes {dimension_semantics = [#tpu.dimension_semantics<parallel>], iteration_bounds = array<i64: 1>, scalar_prefetch = 0 : i64, scratch_operands = 0 : i64, tpu.core_type = #tpu.core_type<tc>, window_params = [{transform_indices = @transform_0, window_bounds = array<i64: 8, 320>}, {transform_indices = @transform_1, window_bounds = array<i64: 8, 128>}, {pipeline_mode = #tpu.pipeline_mode<synchronous>, transform_indices = @transform_2, window_bounds = array<i64: 320, 640>}, {pipeline_mode = #tpu.pipeline_mode<synchronous>, transform_indices = @transform_3, window_bounds = array<i64: 1, 640>}, {transform_indices = @transform_4, window_bounds = array<i64: 8, 128>}, {transform_indices = @transform_5, window_bounds = array<i64: 8, 128>}]} {
    %c0 = arith.constant 0 : index
    %c0_0 = arith.constant 0 : index
    %0 = vector.load %arg1[%c0, %c0_0] : memref<8x320xf32, #tpu.memory_space<vmem>>, vector<8x320xf32>
    %c0_1 = arith.constant 0 : index
    %c0_2 = arith.constant 0 : index
    %1 = vector.load %arg3[%c0_1, %c0_2] : memref<320x640xf32, #tpu.memory_space<vmem>>, vector<320x640xf32>
    %cst = arith.constant dense<0.000000e+00> : vector<8x640xf32>
    %2 = tpu.matmul %0, %1, %cst {dimension_numbers = #tpu.dot_dimension_numbers<[1], [0], [0], [1], [0, 0, 1, 1], [], []>} : vector<8x320xf32>, vector<320x640xf32>, vector<8x640xf32> -> vector<8x640xf32>
    %c0_3 = arith.constant 0 : index
    %c0_4 = arith.constant 0 : index
    %3 = vector.load %arg4[%c0_3, %c0_4] : memref<1x640xf32, #tpu.memory_space<vmem>>, vector<1x640xf32>
    %4 = vector.broadcast %3 : vector<1x640xf32> to vector<8x640xf32>
    %5 = arith.addf %2, %4 : vector<8x640xf32>
    %6 = vector.extract_strided_slice %5 {offsets = [0, 0], sizes = [8, 128], strides = [1, 1]} : vector<8x640xf32> to vector<8x128xf32>
    %7 = arith.negf %6 : vector<8x128xf32>
    %8 = math.exp %7 : vector<8x128xf32>
    %cst_5 = arith.constant 1.000000e+00 : f32
    %9 = vector.broadcast %cst_5 : f32 to vector<8x128xf32>
    %10 = arith.addf %9, %8 : vector<8x128xf32>
    %11 = arith.divf %9, %10 : vector<8x128xf32>
    %12 = vector.extract_strided_slice %5 {offsets = [0, 128], sizes = [8, 128], strides = [1, 1]} : vector<8x640xf32> to vector<8x128xf32>
    %13 = arith.negf %12 : vector<8x128xf32>
    %14 = math.exp %13 : vector<8x128xf32>
    %cst_6 = arith.constant 1.000000e+00 : f32
    %15 = vector.broadcast %cst_6 : f32 to vector<8x128xf32>
    %16 = arith.addf %15, %14 : vector<8x128xf32>
    %17 = arith.divf %15, %16 : vector<8x128xf32>
    %18 = vector.extract_strided_slice %5 {offsets = [0, 256], sizes = [8, 128], strides = [1, 1]} : vector<8x640xf32> to vector<8x128xf32>
    %19 = arith.negf %18 : vector<8x128xf32>
    %20 = math.exp %19 : vector<8x128xf32>
    %cst_7 = arith.constant 1.000000e+00 : f32
    %21 = vector.broadcast %cst_7 : f32 to vector<8x128xf32>
    %22 = arith.addf %21, %20 : vector<8x128xf32>
    %23 = arith.divf %21, %22 : vector<8x128xf32>
    %24 = vector.extract_strided_slice %5 {offsets = [0, 384], sizes = [8, 128], strides = [1, 1]} : vector<8x640xf32> to vector<8x128xf32>
    %25 = math.tanh %24 : vector<8x128xf32>
    %26 = vector.extract_strided_slice %5 {offsets = [0, 512], sizes = [8, 128], strides = [1, 1]} : vector<8x640xf32> to vector<8x128xf32>
    %c0_8 = arith.constant 0 : index
    %c0_9 = arith.constant 0 : index
    %27 = vector.load %arg2[%c0_8, %c0_9] : memref<8x128xf32, #tpu.memory_space<vmem>>, vector<8x128xf32>
    %28 = arith.mulf %17, %27 : vector<8x128xf32>
    %29 = arith.mulf %11, %25 : vector<8x128xf32>
    %30 = arith.addf %28, %29 : vector<8x128xf32>
    %31 = math.tanh %30 : vector<8x128xf32>
    %32 = arith.addf %31, %26 : vector<8x128xf32>
    %33 = arith.mulf %23, %32 : vector<8x128xf32>
    %c0_10 = arith.constant 0 : index
    %c0_11 = arith.constant 0 : index
    %34 = vector.load %arg5[%c0_10, %c0_11] : memref<8x128xf32, #tpu.memory_space<vmem>>, vector<8x128xf32>
    tpu.vector_store %arg5[%c0_10, %c0_11], %33 {strides = array<i32>} : memref<8x128xf32, #tpu.memory_space<vmem>>, vector<8x128xf32>,
    %c0_12 = arith.constant 0 : index
    %c0_13 = arith.constant 0 : index
    %35 = vector.load %arg6[%c0_12, %c0_13] : memref<8x128xf32, #tpu.memory_space<vmem>>, vector<8x128xf32>
    tpu.vector_store %arg6[%c0_12, %c0_13], %30 {strides = array<i32>} : memref<8x128xf32, #tpu.memory_space<vmem>>, vector<8x128xf32>,
    return
  }
  func.func @transform_0(%arg0: i32) -> (i32, i32) {
    %c0_i32 = arith.constant 0 : i32
    %c0_i32_0 = arith.constant 0 : i32
    return %arg0, %c0_i32 : i32, i32
  }
  func.func @transform_1(%arg0: i32) -> (i32, i32) {
    %c0_i32 = arith.constant 0 : i32
    %c0_i32_0 = arith.constant 0 : i32
    return %arg0, %c0_i32 : i32, i32
  }
  func.func @transform_2(%arg0: i32) -> (i32, i32) {
    %c0_i32 = arith.constant 0 : i32
    %c0_i32_0 = arith.constant 0 : i32
    %c0_i32_1 = arith.constant 0 : i32
    return %c0_i32, %c0_i32_0 : i32, i32
  }
  func.func @transform_3(%arg0: i32) -> (i32, i32) {
    %c0_i32 = arith.constant 0 : i32
    %c0_i32_0 = arith.constant 0 : i32
    %c0_i32_1 = arith.constant 0 : i32
    return %c0_i32, %c0_i32_0 : i32, i32
  }
  func.func @transform_4(%arg0: i32) -> (i32, i32) {
    %c0_i32 = arith.constant 0 : i32
    %c0_i32_0 = arith.constant 0 : i32
    return %arg0, %c0_i32 : i32, i32
  }
  func.func @transform_5(%arg0: i32) -> (i32, i32) {
    %c0_i32 = arith.constant 0 : i32
    %c0_i32_0 = arith.constant 0 : i32
    return %arg0, %c0_i32 : i32, i32
  }
}

</mosaic_0001>

<bundles_post_ra>
// kernel: tpu_custom_call.1
= control target key start
LH: loop header
LB: loop body
LE: loop exit
PB: predicated region body
PF: predicated region fallthrough
CT: control target
= control target key end

     0   :  { %11 = vsyncpa [#allocation3], 0  ;;  %s1323_s0 = inlined_call_operand.hbm [shape: f32[8,320], index: 0, kind: input, shape index: {}]   ;;  %s1324_s1 = inlined_call_operand.hbm [shape: f32[8,128], index: 1, kind: input, shape index: {}]   ;;  %s1325_s2 = inlined_call_operand.hbm [shape: f32[320,640], index: 2, kind: input, shape index: {}]   ;;  %s1326_s3 = inlined_call_operand.vmem [shape: f32[1,640], index: 3, kind: input, shape index: {}]   ;;  %s1327_s4 = inlined_call_operand.hbm [shape: f32[8,128], index: 4, kind: output, shape index: {0}]   ;;  %s1328_s5 = inlined_call_operand.hbm [shape: f32[8,128], index: 5, kind: output, shape index: {1}]  }
   0x1   :  { %12 = vsyncpa [#allocation6], 0 }
   0x2   :  { %13 = vsyncpa [#allocation4], 0 }
   0x3   :  { %14 = vsyncpa [#allocation10], 0  ;;  %s1199_s18 = smov [#allocation5]   ;;  %s1200_s20 = smov [#allocation2]  }
   0x4   :  { %s31_s19 = sshll.u32 %s1199_s18, 4  ;;  %s21_s21 = sshll.u32 %s1200_s20, 4  ;;  %s32_s19 = int_to_ptr.vmem [resolvable:$true] %s31_s19  ;;  %s22_s21 = int_to_ptr.vmem [resolvable:$true] %s21_s21 }
   0x5   :  { %s1081_s24 = scalar_lea.hbm %s1324_s1, 128 }
   0x6   :  { %p1082_p0 = scmp.ne.s32.totalorder %s1324_s1, %s1081_s24  ;;  %p1085_p1 = scmp.lt.u32.totalorder %s1081_s24, %s1324_s1 }
   0x8   :  { %p1087_p2 = pnand %p1085_p1, %p1082_p0 }
   0xa   :  { %1090 = shalt.err (!%p1087_p2)
}
   0xb   :  { %s1091_s29 = scalar_lea.vmem %s32_s19, 128  ;;  %p1096_p4 = scmp.lt.s32.totalorder %s32_s19, %s32_s19 }
   0xc   :  { %p1092_p3 = scmp.ne.s32.totalorder %s32_s19, %s1091_s29  ;;  %p1097_p5 = scmp.lt.s32.totalorder %s1091_s29, %s1091_s29 }
   0xe   :  { %p1098_p6 = por %p1097_p5, %p1096_p4 }
  0x10   :  { %p1099_p7 = pnand %p1098_p6, %p1092_p3 }
  0x12   :  { %1102 = shalt.err (!%p1099_p7)
}
  0x13   :  { %34 = dma.hbm_to_vmem [thread:$0]  %s1324_s1, 128, %s32_s19, [#allocation6]  }
  0x14   :  { %s1103_s9 = scalar_lea.hbm %s1323_s0, 384 }
  0x15   :  { %p1104_p8 = scmp.ne.s32.totalorder %s1323_s0, %s1103_s9  ;;  %p1107_p9 = scmp.lt.u32.totalorder %s1103_s9, %s1323_s0 }
  0x17   :  { %p1109_p10 = pnand %p1107_p9, %p1104_p8 }
  0x19   :  { %1112 = shalt.err (!%p1109_p10)
}
  0x1a   :  { %s1113_s14 = scalar_lea.vmem %s22_s21, 384  ;;  %p1118_p12 = scmp.lt.s32.totalorder %s22_s21, %s22_s21 }
  0x1b   :  { %p1114_p11 = scmp.ne.s32.totalorder %s22_s21, %s1113_s14  ;;  %p1119_p13 = scmp.lt.s32.totalorder %s1113_s14, %s1113_s14 }
  0x1d   :  { %p1120_p0 = por %p1119_p13, %p1118_p12 }
  0x1f   :  { %p1121_p1 = pnand %p1120_p0, %p1114_p11 }
  0x21   :  { %1124 = shalt.err (!%p1121_p1)
}
  0x22   :  { %24 = dma.hbm_to_vmem [thread:$0]  %s1323_s0, 384, %s22_s21, [#allocation3]  }
  0x23   :  { %s1201_s16 = smov [#allocation7]   ;;  %s1125_s20 = scalar_lea.hbm %s1325_s2, 25600 }
  0x24   :  { %s40_s17 = sshll.u32 %s1201_s16, 4  ;;  %p1126_p2 = scmp.ne.s32.totalorder %s1325_s2, %s1125_s20  ;;  %s41_s17 = int_to_ptr.vmem [resolvable:$true] %s40_s17 }
  0x25   :  { %p1129_p3 = scmp.lt.u32.totalorder %s1125_s20, %s1325_s2 }
  0x27   :  { %p1131_p4 = pnand %p1129_p3, %p1126_p2 }
  0x29   :  { %1134 = shalt.err (!%p1131_p4)
}
  0x2a   :  { %s1135_s26 = scalar_lea.vmem %s41_s17, 25600  ;;  %p1140_p6 = scmp.lt.s32.totalorder %s41_s17, %s41_s17 }
  0x2b   :  { %p1136_p5 = scmp.ne.s32.totalorder %s41_s17, %s1135_s26  ;;  %p1141_p7 = scmp.lt.s32.totalorder %s1135_s26, %s1135_s26 }
  0x2d   :  { %p1142_p8 = por %p1141_p7, %p1140_p6 }
  0x2f   :  { %p1143_p9 = pnand %p1142_p8, %p1136_p5 }
  0x31   :  { %1146 = shalt.err (!%p1143_p9)
}
  0x32   :  { %s1202_s0 = smov 640   ;;  %s1203_s21 = smov 40  }
  0x33   :  { %46 = dma.hbm_to_vmem [thread:$0]  %s1325_s2, 25600, %s41_s17, [#allocation6], %s1202_s0, %s1202_s0, %s1203_s21  }
  0x34   :  { %1191 = dma.done.wait [#allocation3], 384  }
  0x35   :  { %1192 = vsyncadd [#allocation3], 4294966912 }
  0x36   :  { %1193 = dma.done.wait [#allocation6], 25728  }
  0x37   :  { %1194 = vsyncadd [#allocation6], 4294941568  ;;  %v62_v0 = vld [vmem:[#allocation7 + $0x8] sm:$0xff]  ;;  %v67_v1 = vld [vmem:[#allocation7 + $0x30] sm:$0xff]  ;;  %vm288_vm0 = vcmask 523264   ;;  %vm1206_vm1 = vmmov 0  }
  0x38   :  { %v64_v2 = vld [vmem:[#allocation7 + $0x18] sm:$0xff]  ;;  %v843_v3 = vpack.c.bf16 %v67_v1, %v62_v0  ;;  %v69_v4 = vld [vmem:[#allocation7 + $0x40] sm:$0xff]  ;;  %v66_v6 = vld [vmem:[#allocation7 + $0x28] sm:$0xff] }
  0x39   :  { %v61_v5 = vld [vmem:[#allocation7] sm:$0xff]  ;;  %v923_v7 = vpack.c.bf16 %v69_v4, %v64_v2  ;;  %v63_v9 = vld [vmem:[#allocation7 + $0x10] sm:$0xff]  ;;  %v68_v10 = vld [vmem:[#allocation7 + $0x38] sm:$0xff] }
  0x3a   :  { %v845_v8 = vpack.c.bf16 %v66_v6, %v61_v5  ;;  %v72_v11 = vld [vmem:[#allocation7 + $0x58] sm:$0xff]  ;;  %844 = vmatprep.subr.bf16.mxu0 %v843_v3  ;;  %v925_v12 = vpack.c.bf16 %v68_v10, %v63_v9  ;;  %v77_v13 = vld [vmem:[#allocation7 + $0x80] sm:$0xff]  ;;  %v74_v14 = vld [vmem:[#allocation7 + $0x68] sm:$0xff] }
  0x3b   :  { %v79_v15 = vld [vmem:[#allocation7 + $0x90] sm:$0xff]  ;;  %924 = vmatprep.subr.bf16.mxu1 %v923_v7  ;;  %v847_v16 = vpack.c.bf16 %v77_v13, %v72_v11  ;;  %v76_v19 = vld [vmem:[#allocation7 + $0x78] sm:$0xff]  ;;  %v73_v20 = vld [vmem:[#allocation7 + $0x60] sm:$0xff] }
  0x3c   :  { %846 = vmatpush1.bf16.msra.mxu0 %v845_v8  ;;  %v927_v17 = vpack.c.bf16 %v79_v15, %v74_v14  ;;  %v71_v18 = vld [vmem:[#allocation7 + $0x50] sm:$0xff]  ;;  %926 = vmatpush1.bf16.msra.mxu1 %v925_v12  ;;  %v78_v22 = vld [vmem:[#allocation7 + $0x88] sm:$0xff]  ;;  %v84_v27 = vld [vmem:[#allocation7 + $0xb8] sm:$0xff] }
  0x3d   :  { %v849_v21 = vpack.c.bf16 %v76_v19, %v71_v18  ;;  %v82_v23 = vld [vmem:[#allocation7 + $0xa8] sm:$0xff]  ;;  %v87_v24 = vld [vmem:[#allocation7 + $0xd0] sm:$0xff]  ;;  %848 = vmatprep.subr.bf16.mxu0 %v847_v16  ;;  %v929_v25 = vpack.c.bf16 %v78_v22, %v73_v20  ;;  %v89_v28 = vld [vmem:[#allocation7 + $0xe0] sm:$0xff] }
  0x3e   :  { %928 = vmatprep.subr.bf16.mxu1 %v927_v17  ;;  %v851_v26 = vpack.c.bf16 %v87_v24, %v82_v23  ;;  %v81_v29 = vld [vmem:[#allocation7 + $0xa0] sm:$0xff]  ;;  %v931_v30 = vpack.c.bf16 %v89_v28, %v84_v27  ;;  %v86_v31 = vld [vmem:[#allocation7 + $0xc8] sm:$0xff]  ;;  %v83_v32 = vld [vmem:[#allocation7 + $0xb0] sm:$0xff] }
  0x3f   :  { %v88_v33 = vld [vmem:[#allocation7 + $0xd8] sm:$0xff]  ;;  %v853_v34 = vpack.c.bf16 %v86_v31, %v81_v29  ;;  %v97_v36 = vld [vmem:[#allocation7 + $0x120] sm:$0xff]  ;;  %v94_v37 = vld [vmem:[#allocation7 + $0x108] sm:$0xff] }
  0x40   :  { %850 = vmatpush1.bf16.msra.mxu0 %v849_v21  ;;  %v92_v35 = vld [vmem:[#allocation7 + $0xf8] sm:$0xff]  ;;  %930 = vmatpush1.bf16.msra.mxu1 %v929_v25  ;;  %v933_v38 = vpack.c.bf16 %v88_v33, %v83_v32  ;;  %v99_v40 = vld [vmem:[#allocation7 + $0x130] sm:$0xff]  ;;  %v93_v44 = vld [vmem:[#allocation7 + $0x100] sm:$0xff] }
  0x41   :  { %852 = vmatprep.subr.bf16.mxu0 %v851_v26  ;;  %v855_v39 = vpack.c.bf16 %v97_v36, %v92_v35  ;;  %v91_v41 = vld [vmem:[#allocation7 + $0xf0] sm:$0xff]  ;;  %v96_v42 = vld [vmem:[#allocation7 + $0x118] sm:$0xff]  ;;  %932 = vmatprep.subr.bf16.mxu1 %v931_v30  ;;  %v935_v43 = vpack.c.bf16 %v99_v40, %v94_v37  ;;  %v98_v45 = vld [vmem:[#allocation7 + $0x128] sm:$0xff] }
  0x42   :  { %v102_v46 = vld [vmem:[#allocation7 + $0x148] sm:$0xff]  ;;  %v107_v47 = vld [vmem:[#allocation7 + $0x170] sm:$0xff]  ;;  %v104_v48 = vld [vmem:[#allocation7 + $0x158] sm:$0xff]  ;;  %v857_v50 = vpack.c.bf16 %v96_v42, %v91_v41  ;;  %v937_v51 = vpack.c.bf16 %v98_v45, %v93_v44 }
  0x43   :  { %v109_v49 = vld [vmem:[#allocation7 + $0x180] sm:$0xff]  ;;  %v859_v52 = vpack.c.bf16 %v107_v47, %v102_v46  ;;  %v106_v54 = vld [vmem:[#allocation7 + $0x168] sm:$0xff]  ;;  %v103_v55 = vld [vmem:[#allocation7 + $0x150] sm:$0xff] }
  0x44   :  { %854 = vmatpush1.bf16.msra.mxu0 %v853_v34  ;;  %934 = vmatpush1.bf16.msra.mxu1 %v933_v38  ;;  %v101_v53 = vld [vmem:[#allocation7 + $0x140] sm:$0xff]  ;;  %v939_v56 = vpack.c.bf16 %v109_v49, %v104_v48  ;;  %v108_v57 = vld [vmem:[#allocation7 + $0x178] sm:$0xff]  ;;  %v114_v60 = vld [vmem:[#allocation7 + $0x1a8] sm:$0xff] }
  0x45   :  { %856 = vmatprep.subr.bf16.mxu0 %v855_v39  ;;  %936 = vmatprep.subr.bf16.mxu1 %v935_v43  ;;  %v112_v58 = vld [vmem:[#allocation7 + $0x198] sm:$0xff]  ;;  %v117_v59 = vld [vmem:[#allocation7 + $0x1c0] sm:$0xff]  ;;  %v119_v61 = vld [vmem:[#allocation7 + $0x1d0] sm:$0xff]  ;;  %v861_v62 = vpack.c.bf16 %v106_v54, %v101_v53  ;;  %v941_v63 = vpack.c.bf16 %v108_v57, %v103_v55 }
  0x46   :  { %v863_v0 = vpack.c.bf16 %v117_v59, %v112_v58  ;;  %v111_v1 = vld [vmem:[#allocation7 + $0x190] sm:$0xff]  ;;  %v116_v2 = vld [vmem:[#allocation7 + $0x1b8] sm:$0xff]  ;;  %v113_v3 = vld [vmem:[#allocation7 + $0x1a0] sm:$0xff]  ;;  %v943_v4 = vpack.c.bf16 %v119_v61, %v114_v60 }
  0x47   :  { %v118_v5 = vld [vmem:[#allocation7 + $0x1c8] sm:$0xff]  ;;  %v127_v7 = vld [vmem:[#allocation7 + $0x210] sm:$0xff]  ;;  %v124_v8 = vld [vmem:[#allocation7 + $0x1f8] sm:$0xff]  ;;  %v865_v10 = vpack.c.bf16 %v116_v2, %v111_v1 }
  0x48   :  { %858 = vmatpush1.bf16.msra.mxu0 %v857_v50  ;;  %938 = vmatpush1.bf16.msra.mxu1 %v937_v51  ;;  %v122_v6 = vld [vmem:[#allocation7 + $0x1e8] sm:$0xff]  ;;  %v129_v9 = vld [vmem:[#allocation7 + $0x220] sm:$0xff]  ;;  %v945_v11 = vpack.c.bf16 %v118_v5, %v113_v3  ;;  %v123_v15 = vld [vmem:[#allocation7 + $0x1f0] sm:$0xff] }
  0x49   :  { %860 = vmatprep.subr.bf16.mxu0 %v859_v52  ;;  %940 = vmatprep.subr.bf16.mxu1 %v939_v56  ;;  %v867_v12 = vpack.c.bf16 %v127_v7, %v122_v6  ;;  %v121_v13 = vld [vmem:[#allocation7 + $0x1e0] sm:$0xff]  ;;  %v126_v14 = vld [vmem:[#allocation7 + $0x208] sm:$0xff]  ;;  %v947_v16 = vpack.c.bf16 %v129_v9, %v124_v8  ;;  %v128_v17 = vld [vmem:[#allocation7 + $0x218] sm:$0xff] }
  0x4a   :  { %v132_v18 = vld [vmem:[#allocation7 + $0x238] sm:$0xff]  ;;  %v137_v19 = vld [vmem:[#allocation7 + $0x260] sm:$0xff]  ;;  %v134_v20 = vld [vmem:[#allocation7 + $0x248] sm:$0xff]  ;;  %v869_v22 = vpack.c.bf16 %v126_v14, %v121_v13  ;;  %v949_v23 = vpack.c.bf16 %v128_v17, %v123_v15 }
  0x4b   :  { %v139_v21 = vld [vmem:[#allocation7 + $0x270] sm:$0xff]  ;;  %v871_v24 = vpack.c.bf16 %v137_v19, %v132_v18  ;;  %v136_v26 = vld [vmem:[#allocation7 + $0x258] sm:$0xff]  ;;  %v133_v27 = vld [vmem:[#allocation7 + $0x240] sm:$0xff] }
  0x4c   :  { %862 = vmatpush1.bf16.msra.mxu0 %v861_v62  ;;  %942 = vmatpush1.bf16.msra.mxu1 %v941_v63  ;;  %v131_v25 = vld [vmem:[#allocation7 + $0x230] sm:$0xff]  ;;  %v951_v28 = vpack.c.bf16 %v139_v21, %v134_v20  ;;  %v138_v29 = vld [vmem:[#allocation7 + $0x268] sm:$0xff]  ;;  %v144_v32 = vld [vmem:[#allocation7 + $0x298] sm:$0xff] }
  0x4d   :  { %864 = vmatprep.subr.bf16.mxu0 %v863_v0  ;;  %944 = vmatprep.subr.bf16.mxu1 %v943_v4  ;;  %v142_v30 = vld [vmem:[#allocation7 + $0x288] sm:$0xff]  ;;  %v147_v31 = vld [vmem:[#allocation7 + $0x2b0] sm:$0xff]  ;;  %v149_v33 = vld [vmem:[#allocation7 + $0x2c0] sm:$0xff]  ;;  %v873_v34 = vpack.c.bf16 %v136_v26, %v131_v25  ;;  %v953_v35 = vpack.c.bf16 %v138_v29, %v133_v27 }
  0x4e   :  { %v875_v36 = vpack.c.bf16 %v147_v31, %v142_v30  ;;  %v141_v37 = vld [vmem:[#allocation7 + $0x280] sm:$0xff]  ;;  %v146_v38 = vld [vmem:[#allocation7 + $0x2a8] sm:$0xff]  ;;  %v143_v39 = vld [vmem:[#allocation7 + $0x290] sm:$0xff]  ;;  %v955_v40 = vpack.c.bf16 %v149_v33, %v144_v32 }
  0x4f   :  { %v148_v41 = vld [vmem:[#allocation7 + $0x2b8] sm:$0xff]  ;;  %v157_v43 = vld [vmem:[#allocation7 + $0x300] sm:$0xff]  ;;  %v154_v44 = vld [vmem:[#allocation7 + $0x2e8] sm:$0xff]  ;;  %v877_v46 = vpack.c.bf16 %v146_v38, %v141_v37 }
  0x50   :  { %866 = vmatpush1.bf16.msra.mxu0 %v865_v10  ;;  %946 = vmatpush1.bf16.msra.mxu1 %v945_v11  ;;  %v152_v42 = vld [vmem:[#allocation7 + $0x2d8] sm:$0xff]  ;;  %v159_v45 = vld [vmem:[#allocation7 + $0x310] sm:$0xff]  ;;  %v957_v47 = vpack.c.bf16 %v148_v41, %v143_v39  ;;  %v153_v51 = vld [vmem:[#allocation7 + $0x2e0] sm:$0xff] }
  0x51   :  { %868 = vmatprep.subr.bf16.mxu0 %v867_v12  ;;  %948 = vmatprep.subr.bf16.mxu1 %v947_v16  ;;  %v879_v48 = vpack.c.bf16 %v157_v43, %v152_v42  ;;  %v151_v49 = vld [vmem:[#allocation7 + $0x2d0] sm:$0xff]  ;;  %v156_v50 = vld [vmem:[#allocation7 + $0x2f8] sm:$0xff]  ;;  %v959_v52 = vpack.c.bf16 %v159_v45, %v154_v44  ;;  %v158_v53 = vld [vmem:[#allocation7 + $0x308] sm:$0xff] }
  0x52   :  { %v162_v54 = vld [vmem:[#allocation7 + $0x328] sm:$0xff]  ;;  %v167_v55 = vld [vmem:[#allocation7 + $0x350] sm:$0xff]  ;;  %v164_v56 = vld [vmem:[#allocation7 + $0x338] sm:$0xff]  ;;  %v881_v58 = vpack.c.bf16 %v156_v50, %v151_v49  ;;  %v961_v59 = vpack.c.bf16 %v158_v53, %v153_v51 }
  0x53   :  { %v169_v57 = vld [vmem:[#allocation7 + $0x360] sm:$0xff]  ;;  %v883_v60 = vpack.c.bf16 %v167_v55, %v162_v54  ;;  %v166_v62 = vld [vmem:[#allocation7 + $0x348] sm:$0xff]  ;;  %v163_v63 = vld [vmem:[#allocation7 + $0x330] sm:$0xff] }
  0x54   :  { %870 = vmatpush1.bf16.msra.mxu0 %v869_v22  ;;  %950 = vmatpush1.bf16.msra.mxu1 %v949_v23  ;;  %v161_v61 = vld [vmem:[#allocation7 + $0x320] sm:$0xff]  ;;  %v963_v0 = vpack.c.bf16 %v169_v57, %v164_v56  ;;  %v168_v1 = vld [vmem:[#allocation7 + $0x358] sm:$0xff]  ;;  %v174_v4 = vld [vmem:[#allocation7 + $0x388] sm:$0xff] }
  0x55   :  { %872 = vmatprep.subr.bf16.mxu0 %v871_v24  ;;  %952 = vmatprep.subr.bf16.mxu1 %v951_v28  ;;  %v172_v2 = vld [vmem:[#allocation7 + $0x378] sm:$0xff]  ;;  %v177_v3 = vld [vmem:[#allocation7 + $0x3a0] sm:$0xff]  ;;  %v179_v5 = vld [vmem:[#allocation7 + $0x3b0] sm:$0xff]  ;;  %v885_v6 = vpack.c.bf16 %v166_v62, %v161_v61  ;;  %v965_v8 = vpack.c.bf16 %v168_v1, %v163_v63 }
  0x56   :  { %v171_v7 = vld [vmem:[#allocation7 + $0x370] sm:$0xff]  ;;  %v887_v9 = vpack.c.bf16 %v177_v3, %v172_v2  ;;  %v176_v10 = vld [vmem:[#allocation7 + $0x398] sm:$0xff]  ;;  %v173_v11 = vld [vmem:[#allocation7 + $0x380] sm:$0xff]  ;;  %v967_v13 = vpack.c.bf16 %v179_v5, %v174_v4 }
  0x57   :  { %v178_v12 = vld [vmem:[#allocation7 + $0x3a8] sm:$0xff]  ;;  %v187_v15 = vld [vmem:[#allocation7 + $0x3f0] sm:$0xff]  ;;  %v184_v17 = vld [vmem:[#allocation7 + $0x3d8] sm:$0xff]  ;;  %v889_v19 = vpack.c.bf16 %v176_v10, %v171_v7 }
  0x58   :  { %874 = vmatpush1.bf16.msra.mxu0 %v873_v34  ;;  %954 = vmatpush1.bf16.msra.mxu1 %v953_v35  ;;  %v182_v14 = vld [vmem:[#allocation7 + $0x3c8] sm:$0xff]  ;;  %v189_v18 = vld [vmem:[#allocation7 + $0x400] sm:$0xff]  ;;  %v969_v20 = vpack.c.bf16 %v178_v12, %v173_v11  ;;  %v183_v24 = vld [vmem:[#allocation7 + $0x3d0] sm:$0xff] }
  0x59   :  { %876 = vmatprep.subr.bf16.mxu0 %v875_v36  ;;  %956 = vmatprep.subr.bf16.mxu1 %v955_v40  ;;  %v1275_v16 = vld [vmem:[#allocation2 + $0x8] sm:$0xff]  ;;  %v891_v21 = vpack.c.bf16 %v187_v15, %v182_v14  ;;  %v181_v22 = vld [vmem:[#allocation7 + $0x3c0] sm:$0xff]  ;;  %v971_v25 = vpack.c.bf16 %v189_v18, %v184_v17  ;;  %v188_v26 = vld [vmem:[#allocation7 + $0x3f8] sm:$0xff] }
  0x5a   :  { %356 = vmatprep.mubr.f32.mxu0 %v1275_v16  ;;  %498 = vmatprep.mubr.f32.mxu1 %v1275_v16  ;;  %v186_v23 = vld [vmem:[#allocation7 + $0x3e8] sm:$0xff]  ;;  %v192_v27 = vld [vmem:[#allocation7 + $0x418] sm:$0xff]  ;;  %v197_v28 = vld [vmem:[#allocation7 + $0x440] sm:$0xff]  ;;  %v973_v32 = vpack.c.bf16 %v188_v26, %v183_v24 }
  0x5b   :  { %v194_v29 = vld [vmem:[#allocation7 + $0x428] sm:$0xff]  ;;  %v199_v30 = vld [vmem:[#allocation7 + $0x450] sm:$0xff]  ;;  %v893_v31 = vpack.c.bf16 %v186_v23, %v181_v22  ;;  %v895_v33 = vpack.c.bf16 %v197_v28, %v192_v27  ;;  %v196_v35 = vld [vmem:[#allocation7 + $0x438] sm:$0xff] }
  0x5c   :  { %878 = vmatpush1.bf16.msra.mxu0 %v877_v46  ;;  %958 = vmatpush1.bf16.msra.mxu1 %v957_v47  ;;  %v191_v34 = vld [vmem:[#allocation7 + $0x410] sm:$0xff]  ;;  %v193_v36 = vld [vmem:[#allocation7 + $0x420] sm:$0xff]  ;;  %v975_v37 = vpack.c.bf16 %v199_v30, %v194_v29  ;;  %v198_v38 = vld [vmem:[#allocation7 + $0x448] sm:$0xff] }
  0x5d   :  { %880 = vmatprep.subr.bf16.mxu0 %v879_v48  ;;  %960 = vmatprep.subr.bf16.mxu1 %v959_v52  ;;  %v202_v39 = vld [vmem:[#allocation7 + $0x468] sm:$0xff]  ;;  %v207_v40 = vld [vmem:[#allocation7 + $0x490] sm:$0xff]  ;;  %v204_v41 = vld [vmem:[#allocation7 + $0x478] sm:$0xff]  ;;  %v897_v43 = vpack.c.bf16 %v196_v35, %v191_v34  ;;  %v977_v44 = vpack.c.bf16 %v198_v38, %v193_v36 }
  0x5e   :  { %v209_v42 = vld [vmem:[#allocation7 + $0x4a0] sm:$0xff]  ;;  %v899_v45 = vpack.c.bf16 %v207_v40, %v202_v39  ;;  %v206_v47 = vld [vmem:[#allocation7 + $0x488] sm:$0xff]  ;;  %v203_v48 = vld [vmem:[#allocation7 + $0x470] sm:$0xff]  ;;  %v1204_v39 = vmov 0.0  }
  0x5f   :  { %v201_v46 = vld [vmem:[#allocation7 + $0x460] sm:$0xff]  ;;  %v979_v49 = vpack.c.bf16 %v209_v42, %v204_v41  ;;  %v208_v50 = vld [vmem:[#allocation7 + $0x498] sm:$0xff]  ;;  %v214_v53 = vld [vmem:[#allocation7 + $0x4c8] sm:$0xff] }
  0x60   :  { %882 = vmatpush1.bf16.msra.mxu0 %v881_v58  ;;  %962 = vmatpush1.bf16.msra.mxu1 %v961_v59  ;;  %v212_v51 = vld [vmem:[#allocation7 + $0x4b8] sm:$0xff]  ;;  %v217_v52 = vld [vmem:[#allocation7 + $0x4e0] sm:$0xff]  ;;  %v219_v54 = vld [vmem:[#allocation7 + $0x4f0] sm:$0xff]  ;;  %v901_v55 = vpack.c.bf16 %v206_v47, %v201_v46  ;;  %v981_v56 = vpack.c.bf16 %v208_v50, %v203_v48 }
  0x61   :  { %884 = vmatprep.subr.bf16.mxu0 %v883_v60  ;;  %964 = vmatprep.subr.bf16.mxu1 %v963_v0  ;;  %v903_v57 = vpack.c.bf16 %v217_v52, %v212_v51  ;;  %v211_v58 = vld [vmem:[#allocation7 + $0x4b0] sm:$0xff]  ;;  %v216_v59 = vld [vmem:[#allocation7 + $0x4d8] sm:$0xff]  ;;  %v213_v60 = vld [vmem:[#allocation7 + $0x4c0] sm:$0xff]  ;;  %v983_v61 = vpack.c.bf16 %v219_v54, %v214_v53 }
  0x62   :  { %v218_v62 = vld [vmem:[#allocation7 + $0x4e8] sm:$0xff]  ;;  %v227_v0 = vld [vmem:[#allocation7 + $0x530] sm:$0xff]  ;;  %v224_v1 = vld [vmem:[#allocation7 + $0x518] sm:$0xff]  ;;  %v905_v3 = vpack.c.bf16 %v216_v59, %v211_v58 }
  0x63   :  { %v222_v63 = vld [vmem:[#allocation7 + $0x508] sm:$0xff]  ;;  %v229_v2 = vld [vmem:[#allocation7 + $0x540] sm:$0xff]  ;;  %v985_v4 = vpack.c.bf16 %v218_v62, %v213_v60  ;;  %v228_v10 = vld [vmem:[#allocation7 + $0x538] sm:$0xff] }
  0x64   :  { %886 = vmatpush1.bf16.msra.mxu0 %v885_v6  ;;  %966 = vmatpush1.bf16.msra.mxu1 %v965_v8  ;;  %v907_v5 = vpack.c.bf16 %v227_v0, %v222_v63  ;;  %v221_v6 = vld [vmem:[#allocation7 + $0x500] sm:$0xff]  ;;  %v226_v7 = vld [vmem:[#allocation7 + $0x528] sm:$0xff]  ;;  %v223_v8 = vld [vmem:[#allocation7 + $0x510] sm:$0xff] }
  0x65   :  { %888 = vmatprep.subr.bf16.mxu0 %v887_v9  ;;  %968 = vmatprep.subr.bf16.mxu1 %v967_v13  ;;  %v987_v9 = vpack.c.bf16 %v229_v2, %v224_v1  ;;  %v232_v11 = vld [vmem:[#allocation7 + $0x558] sm:$0xff]  ;;  %v237_v12 = vld [vmem:[#allocation7 + $0x580] sm:$0xff]  ;;  %v234_v13 = vld [vmem:[#allocation7 + $0x568] sm:$0xff]  ;;  %v909_v17 = vpack.c.bf16 %v226_v7, %v221_v6  ;;  %v989_v18 = vpack.c.bf16 %v228_v10, %v223_v8 }
  0x66   :  { %v239_v14 = vld [vmem:[#allocation7 + $0x590] sm:$0xff]  ;;  %v1279_v15 = vld [vmem:[#allocation2] sm:$0xff]  ;;  %v238_v24 = vld [vmem:[#allocation7 + $0x588] sm:$0xff] }
  0x67   :  { %v233_v22 = vld [vmem:[#allocation7 + $0x560] sm:$0xff]  ;;  %v991_v23 = vpack.c.bf16 %v239_v14, %v234_v13  ;;  %v247_v26 = vld [vmem:[#allocation7 + $0x5d0] sm:$0xff]  ;;  %v244_v27 = vld [vmem:[#allocation7 + $0x5b8] sm:$0xff] }
  0x68   :  { %890 = vmatpush1.bf16.msra.mxu0 %v889_v19  ;;  %970 = vmatpush1.bf16.msra.mxu1 %v969_v20  ;;  %v911_v19 = vpack.c.bf16 %v237_v12, %v232_v11  ;;  %v231_v20 = vld [vmem:[#allocation7 + $0x550] sm:$0xff]  ;;  %v249_v28 = vld [vmem:[#allocation7 + $0x5e0] sm:$0xff]  ;;  %v993_v30 = vpack.c.bf16 %v238_v24, %v233_v22  ;;  %v248_v36 = vld [vmem:[#allocation7 + $0x5d8] sm:$0xff] }
  0x69   :  { %892 = vmatprep.subr.bf16.mxu0 %v891_v21  ;;  %972 = vmatprep.subr.bf16.mxu1 %v971_v25  ;;  %v236_v21 = vld [vmem:[#allocation7 + $0x578] sm:$0xff]  ;;  %v242_v25 = vld [vmem:[#allocation7 + $0x5a8] sm:$0xff]  ;;  %v243_v34 = vld [vmem:[#allocation7 + $0x5b0] sm:$0xff]  ;;  %v995_v35 = vpack.c.bf16 %v249_v28, %v244_v27 }
  0x6a   :  { %v913_v29 = vpack.c.bf16 %v236_v21, %v231_v20  ;;  %v257_v38 = vld [vmem:[#allocation7 + $0x620] sm:$0xff]  ;;  %v254_v40 = vld [vmem:[#allocation7 + $0x608] sm:$0xff]  ;;  %v259_v41 = vld [vmem:[#allocation7 + $0x630] sm:$0xff] }
  0x6b   :  { %v256_v46 = vld [vmem:[#allocation7 + $0x618] sm:$0xff]  ;;  %v253_v47 = vld [vmem:[#allocation7 + $0x600] sm:$0xff]  ;;  %v999_v48 = vpack.c.bf16 %v259_v41, %v254_v40  ;;  %v150_v51 = vld [vmem:[#allocation7 + $0x2c8] sm:$0xff] }
  0x6c   :  { %894 = vmatpush1.bf16.msra.mxu0 %v893_v31  ;;  %974 = vmatpush1.bf16.msra.mxu1 %v973_v32  ;;  %v915_v31 = vpack.c.bf16 %v247_v26, %v242_v25  ;;  %v241_v32 = vld [vmem:[#allocation7 + $0x5a0] sm:$0xff]  ;;  %v160_v58 = vld [vmem:[#allocation7 + $0x318] sm:$0xff]  ;;  %v230_v60 = vld [vmem:[#allocation7 + $0x548] sm:$0xff] }
  0x6d   :  { %896 = vmatprep.subr.bf16.mxu0 %v895_v33  ;;  %976 = vmatprep.subr.bf16.mxu1 %v975_v37  ;;  %v246_v33 = vld [vmem:[#allocation7 + $0x5c8] sm:$0xff]  ;;  %v252_v37 = vld [vmem:[#allocation7 + $0x5f8] sm:$0xff]  ;;  %v145_v50 = vld [vmem:[#allocation7 + $0x2a0] sm:$0xff] }
  0x6e   :  { %v917_v42 = vpack.c.bf16 %v246_v33, %v241_v32  ;;  %v1003_v54 = vpack.c.bf16 %v150_v51, %v145_v50  ;;  %v225_v59 = vld [vmem:[#allocation7 + $0x520] sm:$0xff]  ;;  %v75_v0 = vld [vmem:[#allocation7 + $0x70] sm:$0xff]  ;;  %v80_v1 = vld [vmem:[#allocation7 + $0x98] sm:$0xff]  ;;  %v263_v51 = vlaneseq }
  0x6f   :  { %v165_v2 = vld [vmem:[#allocation7 + $0x340] sm:$0xff]  ;;  %v235_v6 = vld [vmem:[#allocation7 + $0x570] sm:$0xff]  ;;  %v240_v7 = vld [vmem:[#allocation7 + $0x598] sm:$0xff]  ;;  %v1009_v8 = vpack.c.bf16 %v80_v1, %v75_v0 }
  0x70   :  { %898 = vmatpush1.bf16.msra.mxu0 %v897_v43  ;;  %978 = vmatpush1.bf16.msra.mxu1 %v977_v44  ;;  %v997_v43 = vpack.c.bf16 %v248_v36, %v243_v34  ;;  %v919_v44 = vpack.c.bf16 %v257_v38, %v252_v37  ;;  %v85_v10 = vld [vmem:[#allocation7 + $0xc0] sm:$0xff]  ;;  %v90_v11 = vld [vmem:[#allocation7 + $0xe8] sm:$0xff]  ;;  %v175_v12 = vld [vmem:[#allocation7 + $0x390] sm:$0xff]  ;;  %v1039_v13 = vpack.c.bf16 %v240_v7, %v235_v6 }
  0x71   :  { %900 = vmatprep.subr.bf16.mxu0 %v899_v45  ;;  %980 = vmatprep.subr.bf16.mxu1 %v979_v49  ;;  %v251_v45 = vld [vmem:[#allocation7 + $0x5f0] sm:$0xff]  ;;  %v258_v49 = vld [vmem:[#allocation7 + $0x628] sm:$0xff]  ;;  %v180_v14 = vld [vmem:[#allocation7 + $0x3b8] sm:$0xff] }
  0x72   :  { %v921_v52 = vpack.c.bf16 %v256_v46, %v251_v45  ;;  %v1001_v53 = vpack.c.bf16 %v258_v49, %v253_v47  ;;  %v1015_v20 = vpack.c.bf16 %v180_v14, %v175_v12  ;;  %v95_v21 = vld [vmem:[#allocation7 + $0x110] sm:$0xff]  ;;  %v100_v22 = vld [vmem:[#allocation7 + $0x138] sm:$0xff]  ;;  %v190_v25 = vld [vmem:[#allocation7 + $0x408] sm:$0xff] }
  0x73   :  { %v255_v26 = vld [vmem:[#allocation7 + $0x610] sm:$0xff]  ;;  %v260_v27 = vld [vmem:[#allocation7 + $0x638] sm:$0xff]  ;;  %v1017_v28 = vpack.c.bf16 %v100_v22, %v95_v21  ;;  %v205_v38 = vld [vmem:[#allocation7 + $0x480] sm:$0xff] }
  0x74   :  { %902 = vmatpush1.bf16.msra.mxu0 %v901_v55  ;;  %982 = vmatpush1.bf16.msra.mxu1 %v981_v56  ;;  %v65_v55 = vld [vmem:[#allocation7 + $0x20] sm:$0xff]  ;;  %v70_v56 = vld [vmem:[#allocation7 + $0x48] sm:$0xff]  ;;  %v195_v32 = vld [vmem:[#allocation7 + $0x430] sm:$0xff] }
  0x75   :  { %904 = vmatprep.subr.bf16.mxu0 %v903_v57  ;;  %984 = vmatprep.subr.bf16.mxu1 %v983_v61  ;;  %v155_v57 = vld [vmem:[#allocation7 + $0x2f0] sm:$0xff]  ;;  %v1005_v62 = vpack.c.bf16 %v70_v56, %v65_v55  ;;  %v200_v33 = vld [vmem:[#allocation7 + $0x458] sm:$0xff] }
  0x76   :  { %v1285_v61 = vld [vmem:[#allocation2 + $0x10] sm:$0xff]  ;;  %v1007_v63 = vpack.c.bf16 %v160_v58, %v155_v57  ;;  %v120_v37 = vld [vmem:[#allocation7 + $0x1d8] sm:$0xff] }
  0x77   :  { %v115_v36 = vld [vmem:[#allocation7 + $0x1b0] sm:$0xff]  ;;  %v220_v45 = vld [vmem:[#allocation7 + $0x4f8] sm:$0xff] }
  0x78   :  { %906 = vmatpush1.bf16.msra.mxu0 %v905_v3  ;;  %986 = vmatpush1.bf16.msra.mxu1 %v985_v4  ;;  %v1036_v3 = vpack.c.bf16 %v230_v60, %v225_v59  ;;  %v170_v4 = vld [vmem:[#allocation7 + $0x368] sm:$0xff]  ;;  %v1025_v40 = vpack.c.bf16 %v120_v37, %v115_v36  ;;  %v140_v49 = vld [vmem:[#allocation7 + $0x278] sm:$0xff] }
  0x79   :  { %908 = vmatprep.subr.bf16.mxu0 %v907_v5  ;;  %988 = vmatprep.subr.bf16.mxu1 %v987_v9  ;;  %v1205_v5 = vmov 0.0|0.0   ;;  %v1011_v9 = vpack.c.bf16 %v170_v4, %v165_v2 }
  0x7b   :  { %357 = vmatmul.mubr.f32.vlgmr.msra.gmra.mrb[0].mxu0 %v1279_v15  ;;  %499 = vmatmul.mubr.f32.vlgmr.msra.gmra.mrb[0].mxu1 %v1279_v15 }
  0x7c   :  { %910 = vmatpush1.bf16.msra.mxu0 %v909_v17  ;;  %990 = vmatpush1.bf16.msra.mxu1 %v989_v18  ;;  %v245_v17 = vld [vmem:[#allocation7 + $0x5c0] sm:$0xff]  ;;  %v250_v18 = vld [vmem:[#allocation7 + $0x5e8] sm:$0xff] }
  0x7d   :  { %912 = vmatprep.subr.bf16.mxu0 %v911_v19  ;;  %992 = vmatprep.subr.bf16.mxu1 %v991_v23  ;;  %v1013_v19 = vpack.c.bf16 %v90_v11, %v85_v10  ;;  %v185_v23 = vld [vmem:[#allocation7 + $0x3e0] sm:$0xff]  ;;  %v1042_v24 = vpack.c.bf16 %v250_v18, %v245_v17  ;;  %v735_v18 = vld [vmem:[#allocation5] sm:$0xff] }
  0x7e   :  { %427 = vmatprep.mubr.f32.mxu0 %v1204_v39  ;;  %569 = vmatprep.mubr.f32.mxu1 %v1204_v39 }
  0x80   :  { %914 = vmatpush1.bf16.msra.mxu0 %v913_v29  ;;  %994 = vmatpush1.bf16.msra.mxu1 %v993_v30  ;;  %v105_v29 = vld [vmem:[#allocation7 + $0x160] sm:$0xff]  ;;  %v110_v30 = vld [vmem:[#allocation7 + $0x188] sm:$0xff] }
  0x81   :  { %916 = vmatprep.subr.bf16.mxu0 %v915_v31  ;;  %996 = vmatprep.subr.bf16.mxu1 %v995_v35  ;;  %v1045_v31 = vpack.c.bf16 %v260_v27, %v255_v26  ;;  %v1021_v34 = vpack.c.bf16 %v110_v30, %v105_v29  ;;  %v1023_v35 = vpack.c.bf16 %v200_v33, %v195_v32 }
  0x84   :  { %918 = vmatpush1.bf16.msra.mxu0 %v917_v42  ;;  %998 = vmatpush1.bf16.msra.mxu1 %v997_v43  ;;  %v125_v42 = vld [vmem:[#allocation7 + $0x200] sm:$0xff]  ;;  %v130_v43 = vld [vmem:[#allocation7 + $0x228] sm:$0xff] }
  0x85   :  { %920 = vmatprep.subr.bf16.mxu0 %v919_v44  ;;  %1000 = vmatprep.subr.bf16.mxu1 %v999_v48  ;;  %v215_v44 = vld [vmem:[#allocation7 + $0x4d0] sm:$0xff]  ;;  %v1029_v46 = vpack.c.bf16 %v130_v43, %v125_v42 }
  0x86   :  { %v1031_v47 = vpack.c.bf16 %v220_v45, %v215_v44  ;;  %v135_v48 = vld [vmem:[#allocation7 + $0x250] sm:$0xff] }
  0x87   :  { %v1033_v50 = vpack.c.bf16 %v140_v49, %v135_v48 }
  0x88   :  { %922 = vmatpush1.bf16.msra.mxu0 %v921_v52  ;;  %1002 = vmatpush1.bf16.msra.mxu1 %v1001_v53  ;;  %v264_v52 = vshrl.u32 %v263_v51, 7 }
  0x89   :  { %1004 = vmatprep.subr.bf16.mxu0 %v1003_v54  ;;  %1035 = vmatprep.subr.bf16.mxu1 %v1205_v5  ;;  %v261_v54 = vld [vmem:[%s1326_s3] sm:$0x1f]  ;;  %s1207_s3 = smov [#allocation9]  }
  0x8a   :  { %v265_v53 = vsub.s32 0, %v264_v52  ;;  %v269_v55 = vsub.s32 1, %v264_v52  ;;  %v273_v1 = vsub.s32 2, %v264_v52  ;;  %s760_s30 = sshll.u32 %s1207_s3, 4  ;;  %s761_s30 = int_to_ptr.vmem [resolvable:$true] %s760_s30 }
  0x8b   :  { %774 = vmatmul.mubr.msk.f32.vlgmr.msra.gmra.mrb[0].mxu0 %vm288_vm0, %v1285_v61  ;;  %775 = vmatmul.mubr.msk.f32.vlgmr.msra.gmra.mrb[0].mxu1 %vm288_vm0, %v1285_v61  ;;  %s1147_s6 = scalar_lea.vmem %s761_s30, 128  ;;  %p1152_p11 = scmp.lt.s32.totalorder %s761_s30, %s761_s30 }
  0x8c   :  { %1006 = vmatpush3.bf16.msra.mxu0 %v1005_v62  ;;  %1037 = vmatpush3.bf16.msra.mxu1 %v1036_v3  ;;  %v266_v56 = vrot.slane %v261_v54, %v265_v53  ;;  %v270_v57 = vrot.slane %v261_v54, %v269_v55  ;;  %v274_v3 = vrot.slane %v261_v54, %v273_v1  ;;  %p1148_p10 = scmp.ne.s32.totalorder %s761_s30, %s1147_s6  ;;  %p1153_p12 = scmp.lt.s32.totalorder %s1147_s6, %s1147_s6 }
  0x8d   :  { %1008 = vmatprep.subr.bf16.mxu0 %v1007_v63  ;;  %1038 = vmatprep.subr.bf16.mxu1 %v1205_v5 }
  0x8e   :  { %640 = vmatprep.mubr.f32.mxu0 %v1275_v16  ;;  %840 = vmatprep.mubr.msk.f32.mxu1 %vm1206_vm1, %v1204_v39  ;;  %v1019_v16 = vpack.c.bf16 %v190_v25, %v185_v23  ;;  %v210_v39 = vld [vmem:[#allocation7 + $0x4a8] sm:$0xff]  ;;  %p1154_p13 = por %p1153_p12, %p1152_p11 }
  0x8f   :  { %v1027_v41 = vpack.c.bf16 %v210_v39, %v205_v38 }
  0x90   :  { %1010 = vmatpush3.bf16.msra.mxu0 %v1009_v8  ;;  %1040 = vmatpush3.bf16.msra.mxu1 %v1039_v13  ;;  %p1155_p0 = pnand %p1154_p13, %p1148_p10 }
  0x91   :  { %1012 = vmatprep.subr.bf16.mxu0 %v1011_v9  ;;  %1041 = vmatprep.subr.bf16.mxu1 %v1205_v5 }
  0x94   :  { %1014 = vmatpush3.bf16.msra.mxu0 %v1013_v19  ;;  %1043 = vmatpush3.bf16.msra.mxu1 %v1042_v24  ;;  %v281_v19 = vsub.s32 4, %v264_v52 }
  0x95   :  { %1016 = vmatprep.subr.bf16.mxu0 %v1015_v20  ;;  %1044 = vmatprep.subr.bf16.mxu1 %v1205_v5 }
  0x96   :  { %v282_v25 = vrot.slane %v261_v54, %v281_v19 }
  0x98   :  { %1018 = vmatpush3.bf16.msra.mxu0 %v1017_v28  ;;  %1046 = vmatpush3.bf16.msra.mxu1 %v1045_v31 }
  0x99   :  { %1020 = vmatprep.subr.bf16.mxu0 %v1019_v16 }
  0x9b   :  { %841 = vmatmul.mubr.msk.f32.vlgmr.msra.gmra.mrb[2].mxu1 %vm288_vm0, %v1285_v61 }
  0x9c   :  { %1022 = vmatpush3.bf16.msra.mxu0 %v1021_v34 }
  0x9d   :  { %1024 = vmatprep.subr.bf16.mxu0 %v1023_v35 }
  0xa0   :  { %1026 = vmatpush3.bf16.msra.mxu0 %v1025_v40 }
  0xa1   :  { %1028 = vmatprep.subr.bf16.mxu0 %v1027_v41 }
  0xa4   :  { %1030 = vmatpush3.bf16.msra.mxu0 %v1029_v46 }
  0xa5   :  { %1032 = vmatprep.subr.bf16.mxu0 %v1031_v47 }
  0xa8   :  { %1034 = vmatpush3.bf16.msra.mxu0 %v1033_v50 }
  0xab   :  { %641 = vmatmul.mubr.f32.vlgmr.msra.gmra.mrb[2].mxu0 %v1279_v15  ;;  %v277_v15 = vsub.s32 3, %v264_v52 }
  0xad   :  { %v278_v4 = vrot.slane %v261_v54, %v277_v15 }
 0x15e   :  { %v429_v58 = vpop.f32.mrb[0].mxu0  ;;  %v571_v60 = vpop.f32.mrb[0].mxu1 }
 0x15f   :  { %v1047_v59 = vadd.f32 %v429_v58, %v266_v56  ;;  %v431_v61 = vpop.f32.mrb[1].mxu0  ;;  %v573_v63 = vpop.f32.mrb[1].mxu1  ;;  %v1049_v5 = vadd.f32 %v571_v60, %v274_v3 }
 0x160   :  { %v1048_v62 = vadd.f32 %v431_v61, %v270_v57  ;;  %v1050_v6 = vadd.f32 %v573_v63, %v278_v4 }
 0x161   :  { %v777_v0 = vmul.f32 -1.442695, %v1047_v59  ;;  %v779_v8 = vmul.f32 -1.442695, %v1049_v5 }
 0x162   :  { %v778_v2 = vmul.f32 -1.442695, %v1048_v62 }
 0x163   :  { %1065 = vpow2.f32 %v777_v0 }
 0x164   :  { %1067 = vpow2.f32 %v778_v2 }
 0x165   :  { %1069 = vtanh.f32 %v1050_v6 }
 0x16d   :  { %v1066_v7 = vpop.eup %1065 }
 0x16e   :  { %v719_v9 = vadd.f32 1.0, %v1066_v7  ;;  %v1068_v10 = vpop.eup %1067  ;;  %v712_v11 = vpop.f32.mrb[2].mxu1 }
 0x16f   :  { %v725_v12 = vadd.f32 1.0, %v1068_v10  ;;  %v842_v13 = vpop.f32.mrb[3].mxu1  ;;  %v1070_v14 = vpop.eup %1069 }
 0x170   :  { %1071 = vrcp.f32 %v719_v9 }
 0x171   :  { %1073 = vpow2.f32 %v779_v8 }
 0x172   :  { %1075 = vrcp.f32 %v725_v12 }
 0x17a   :  { %v1072_v17 = vpop.eup %1071 }
 0x17b   :  { %v1074_v20 = vpop.eup %1073  ;;  %v737_v21 = vmul.f32 %v1072_v17, %v1070_v14 }
 0x17c   :  { %v1076_v22 = vpop.eup %1075  ;;  %v731_v26 = vadd.f32 1.0, %v1074_v20 }
 0x17d   :  { %v736_v23 = vmul.f32 %v1076_v22, %v735_v18 }
 0x17e   :  { %v812_v24 = vpop.f32.mrb[2].mxu0 }
 0x17f   :  { %v738_v27 = vadd.f32 %v737_v21, %v736_v23  ;;  %v813_v28 = vpop.f32.mrb[3].mxu0 }
 0x180   :  { %v814_v16 = vadd.f32 %v813_v28, %v812_v24 }
 0x181   :  { %743 = vst [vmem:[#allocation9] sm:$0xff] %v738_v27  ;;  %1077 = vtanh.f32 %v738_v27 }
 0x182   :  { %v643_v29 = vadd.f32 %v814_v16, %v282_v25 }
 0x183   :  { %1158 = shalt.err (!%p1155_p0)
}
 0x184   :  { %s1159_s9 = scalar_lea.hbm %s1328_s5, 128 }
 0x185   :  { %p1160_p1 = scmp.ne.s32.totalorder %s1328_s5, %s1159_s9  ;;  %p1163_p2 = scmp.lt.u32.totalorder %s1159_s9, %s1328_s5 }
 0x187   :  { %p1165_p3 = pnand %p1163_p2, %p1160_p1 }
 0x189   :  { %1168 = shalt.err (!%p1165_p3)
}
 0x18a   :  { %763 = dma.vmem_to_hbm [thread:$0]  %s761_s30, 128, %s1328_s5, [#allocation10]   ;;  %1079 = vrcp.f32 %v731_v26  ;;  %v713_v30 = vadd.f32 %v712_v11, %v643_v29 }
 0x18b   :  { %v1078_v31 = vpop.eup %1077  ;;  %s1208_s15 = smov [#allocation8]  }
 0x18c   :  { %s750_s16 = sshll.u32 %s1208_s15, 4  ;;  %v740_v32 = vadd.f32 %v1078_v31, %v713_v30  ;;  %s751_s16 = int_to_ptr.vmem [resolvable:$true] %s750_s16 }
 0x18d   :  { %s1169_s17 = scalar_lea.vmem %s751_s16, 128  ;;  %p1174_p5 = scmp.lt.s32.totalorder %s751_s16, %s751_s16 }
 0x18e   :  { %p1170_p4 = scmp.ne.s32.totalorder %s751_s16, %s1169_s17  ;;  %p1175_p6 = scmp.lt.s32.totalorder %s1169_s17, %s1169_s17 }
 0x190   :  { %p1176_p7 = por %p1175_p6, %p1174_p5 }
 0x192   :  { %p1177_p8 = pnand %p1176_p7, %p1170_p4 }
 0x194   :  { %v1080_v33 = vpop.eup %1079 }
 0x195   :  { %v741_v34 = vmul.f32 %v1080_v33, %v740_v32 }
 0x197   :  { %742 = vst [vmem:[#allocation8] sm:$0xff] %v741_v34 }
 0x198   :  { %1180 = shalt.err (!%p1177_p8)
}
 0x199   :  { %s1181_s5 = scalar_lea.hbm %s1327_s4, 128 }
 0x19a   :  { %p1182_p9 = scmp.ne.s32.totalorder %s1327_s4, %s1181_s5  ;;  %p1185_p10 = scmp.lt.u32.totalorder %s1181_s5, %s1327_s4 }
 0x19c   :  { %p1187_p11 = pnand %p1185_p10, %p1182_p9 }
 0x19e   :  { %1190 = shalt.err (!%p1187_p11)
}
 0x19f   :  { %753 = dma.vmem_to_hbm [thread:$0]  %s751_s16, 128, %s1327_s4, [#allocation4]  }
 0x1a0   :  { %1195 = dma.done.wait [#allocation4], 128  }
 0x1a1   :  { %1196 = vsyncadd [#allocation4], 4294967168 }
 0x1a2   :  { %1197 = dma.done.wait [#allocation10], 128  }
 0x1a3   :  { %1198 = vsyncadd [#allocation10], 4294967168 }
 0x1a4   :  { %770 = vsyncpa [#allocation3], 1 }
 0x1a5   :  { %771 = vsyncpa [#allocation6], 1 }
 0x1a6   :  { %772 = vsyncpa [#allocation4], 1 }
 0x1a7   :  { %773 = vsyncpa [#allocation10], 1 }

</bundles_post_ra>
